<compile_context>
chip_gen: v7x
topology: tpu7x:2x2x1
jax: 0.10.0
libtpu: 0.0.40
codegen_flags: <defaults>
</compile_context>

<pallas_src>
import functools

import jax
import jax.numpy as jnp
from jax.experimental import pallas as pl
from jax.experimental.pallas import tpu as pltpu

RADIUS = 4.0
BN_EPS = 0.2


# ------------------------------ fused kernel ------------------------------ #

def _gcn_gmp_fused_kernel(
    x_ref, pos_ref, post_ref, bcol_ref, brow_ref,
    w1_ref, s1_ref, o1_ref,
    wg_ref, bg_ref,
    w2_ref, s2_ref, o2_ref,
    w3_ref, b3_ref,
    out_ref,
    *, mxu_bf16: bool,
):
    n = x_ref.shape[0]
    b = out_ref.shape[0]
    p = pos_ref.shape[1]
    mxu_dtype = jnp.bfloat16 if mxu_bf16 else jnp.float32

    # ---- lin01: Linear(bias=False) -> ReLU -> BatchNorm(eval, folded) -> Dropout(id)
    h = jnp.dot(x_ref[...].astype(mxu_dtype), w1_ref[...],
                preferred_element_type=jnp.float32)                     # [N,H]
    h = jnp.maximum(h, 0.0) * s1_ref[...] + o1_ref[...]

    # ---- radius_graph + self loops: dense [N,N] A_hat = A + I, VPU broadcast math.
    # d2(i,i) = 0 <= r^2 and same_graph(i,i) is true, so the select below already
    # contains the diagonal (GCNConv's added self loop) -- no is_diag machinery.
    diff0 = pos_ref[:, 0:1] - post_ref[0:1, :]                          # [N,1]-[1,N]
    d2 = diff0 * diff0
    for k in range(1, p):                                               # static tiny loop (P=2)
        diff = pos_ref[:, k:k + 1] - post_ref[k:k + 1, :]
        d2 = d2 + diff * diff

    same_graph = bcol_ref[...] == brow_ref[...]                         # [N,N] bool
    a_hat = jnp.where((d2 <= RADIUS * RADIUS) & same_graph, 1.0, 0.0)   # [N,N] 0/1 = A + I

    # ---- symmetric degree normalization, applied per node around the matmul:
    #      conv = rsqrt(deg) * (A_hat @ (rsqrt(deg) * xw))   (A_hat stays raw 0/1)
    deg = jnp.sum(a_hat, axis=1, keepdims=True)                         # [N,1] lane reduce
    inv_sqrt_deg = jax.lax.rsqrt(deg)                                   # deg >= 1 (self loop)

    # ---- GCNConv -> ReLU
    xw = jnp.dot(h.astype(mxu_dtype), wg_ref[...],
                 preferred_element_type=jnp.float32)                    # [N,H]
    xw_scaled = (xw * inv_sqrt_deg).astype(mxu_dtype)
    agg = jnp.dot(a_hat.astype(mxu_dtype), xw_scaled,
                  preferred_element_type=jnp.float32)                   # [N,H]
    x_g1 = jnp.maximum(agg * inv_sqrt_deg + bg_ref[...], 0.0)

    # ---- GraphSizeNorm + global_mean_pool, fused:
    #      pooled_j = count_j^{-3/2} * sum_{i in graph j} x_g1[i]
    g_sub = jax.lax.broadcasted_iota(jnp.int32, (b, n), 0)              # graph id on sublanes
    pmemb = (brow_ref[...] == g_sub).astype(jnp.float32)                # [B,N] 0/1
    counts = jnp.maximum(jnp.sum(pmemb, axis=1, keepdims=True), 1.0)    # [B,1] (guard empty)
    scale = jax.lax.rsqrt(counts) * pl.reciprocal(counts, approx=True)  # counts^{-3/2}
    pooled = scale * jnp.dot(pmemb.astype(mxu_dtype), x_g1.astype(mxu_dtype),
                             preferred_element_type=jnp.float32)        # [B,H]

    # ---- lin2: Dropout(id) -> Linear(bias=False) -> ReLU -> BatchNorm(eval, folded)
    h2 = jnp.dot(pooled.astype(mxu_dtype), w2_ref[...],
                 preferred_element_type=jnp.float32)                    # [B,H2]
    h2 = jnp.maximum(h2, 0.0) * s2_ref[...] + o2_ref[...]

    # ---- lin3: Linear(bias=True); output is lane-padded to a 128 multiple (dense vst)
    out_ref[...] = (jnp.dot(h2.astype(mxu_dtype), w3_ref[...],
                            preferred_element_type=jnp.float32) + b3_ref[...])


# --------------------------------- wrapper --------------------------------- #

def gcn_gmp_forward(params, x, pos, batch_ids, num_graphs, *, mxu_bf16=True):
    """x: [N, F_in] f32, pos: [N, P] f32, batch_ids: [N] int32 -> {'A2': [B, A2_D]}."""
    n, f_in = x.shape
    h_dim = params["w1"].shape[1]
    h2_dim = params["w2"].shape[1]
    a2_d = params["w3"].shape[1]
    b = num_graphs
    a2_pad = ((a2_d + 127) // 128) * 128          # lane-dense output width

    # Fold eval-mode BatchNorm into a single scale/bias (computed once, [1,H]).
    s1 = params["bn1_g"] * jax.lax.rsqrt(params["bn1_v"] + BN_EPS)
    o1 = params["bn1_b"] - params["bn1_m"] * s1
    s2 = params["bn2_g"] * jax.lax.rsqrt(params["bn2_v"] + BN_EPS)
    o2 = params["bn2_b"] - params["bn2_m"] * s2

    mxu_dtype = jnp.bfloat16 if mxu_bf16 else jnp.float32
    w1 = params["w1"].astype(mxu_dtype)
    wg = params["w_gcn"].astype(mxu_dtype)
    w2 = params["w2"].astype(mxu_dtype)
    w3 = jnp.pad(params["w3"], ((0, 0), (0, a2_pad - a2_d))).astype(mxu_dtype)
    b3 = jnp.pad(params["b3"], ((0, 0), (0, a2_pad - a2_d)))

    bids = batch_ids.astype(jnp.int32)
    bcol = bids.reshape(n, 1)          # sublane orientation
    brow = bids.reshape(1, n)          # lane orientation
    pos_t = pos.T                      # [P, N] (lane = nodes)

    inputs = (x, pos, pos_t, bcol, brow,
              w1, s1, o1,
              wg, params["b_gcn"],
              w2, s2, o2,
              w3, b3)

    flops = 2.0 * (n * f_in * h_dim          # lin01
                   + n * h_dim * h_dim       # h @ w_gcn
                   + n * n * h_dim           # A_hat @ xw
                   + b * n * h_dim           # pooling matmul
                   + b * h_dim * h2_dim      # lin2
                   + b * h2_dim * a2_pad)    # lin3
    p = pos.shape[1]
    flops += (3.0 * p + 3.0) * n * n + 4.0 * n * h_dim   # adjacency + elementwise (rough)
    transcendentals = n + 3.0 * b                         # rsqrt(deg), rsqrt/recip(counts)
    bytes_accessed = (sum(int(a.size) * a.dtype.itemsize for a in inputs)
                      + b * a2_pad * 4)

    out_pad = pl.pallas_call(
        functools.partial(_gcn_gmp_fused_kernel, mxu_bf16=mxu_bf16),
        out_shape=jax.ShapeDtypeStruct((b, a2_pad), jnp.float32),
        in_specs=[pl.BlockSpec(memory_space=pltpu.MemorySpace.VMEM)
                  for _ in inputs],
        out_specs=pl.BlockSpec(memory_space=pltpu.MemorySpace.VMEM),
        compiler_params=pltpu.CompilerParams(vmem_limit_bytes=32 * 1024 * 1024),
        cost_estimate=pl.CostEstimate(
            flops=int(flops),
            transcendentals=int(transcendentals),
            bytes_accessed=int(bytes_accessed)),
    )(*inputs)
    return {"A2": out_pad[:, :a2_d]}


# ----------------------------------- main ---------------------------------- #

if __name__ == "__main__":
    # Small shapes consistent with the module (scaled down):
    #   lin01: F_IN -> H ; GCNConv: H -> H ; lin2: H -> H2 ; lin3: H2 -> A2_D
    N, B, F_IN, H, H2, A2_D, P = 16, 2, 64, 128, 64, 8, 2

    key = jax.random.PRNGKey(0)
    ks = jax.random.split(key, 14)

    params = {
        "w1":    jax.random.normal(ks[0], (F_IN, H), jnp.float32) * 0.05,
        "bn1_g": jax.random.normal(ks[1], (1, H), jnp.float32) * 0.1 + 1.0,
        "bn1_b": jax.random.normal(ks[2], (1, H), jnp.float32) * 0.1,
        "bn1_m": jax.random.normal(ks[3], (1, H), jnp.float32) * 0.1,
        "bn1_v": jax.random.uniform(ks[4], (1, H), jnp.float32, 0.5, 1.5),
        "w_gcn": jax.random.normal(ks[5], (H, H), jnp.float32) * 0.05,
        "b_gcn": jax.random.normal(ks[6], (1, H), jnp.float32) * 0.05,
        "w2":    jax.random.normal(ks[7], (H, H2), jnp.float32) * 0.05,
        "bn2_g": jax.random.normal(ks[8], (1, H2), jnp.float32) * 0.1 + 1.0,
        "bn2_b": jax.random.normal(ks[9], (1, H2), jnp.float32) * 0.1,
        "bn2_m": jax.random.normal(ks[10], (1, H2), jnp.float32) * 0.1,
        "bn2_v": jax.random.uniform(ks[11], (1, H2), jnp.float32, 0.5, 1.5),
        "w3":    jax.random.normal(ks[12], (H2, A2_D), jnp.float32) * 0.05,
        "b3":    jax.random.normal(ks[13], (1, A2_D), jnp.float32) * 0.05,
    }

    dk = jax.random.split(jax.random.PRNGKey(1), 2)
    x = jax.random.normal(dk[0], (N, F_IN), jnp.float32)
    pos = jax.random.uniform(dk[1], (N, P), jnp.float32, 0.0, 6.0)   # data.pos (pseudo)
    batch_ids = jnp.concatenate([jnp.zeros(9, jnp.int32), jnp.ones(7, jnp.int32)])

    out = gcn_gmp_forward(params, x, pos, batch_ids, B)
    jax.block_until_ready(out["A2"])
    assert out["A2"].shape == (B, A2_D)
    print("KERNEL_OK")
</pallas_src>

<mosaic_0001>
module attributes {stable_mosaic.version = 11 : i64} {
  func.func @_gcn_gmp_fused_kernel(%arg0: memref<16x64xf32, #tpu.memory_space<vmem>>, %arg1: memref<16x2xf32, #tpu.memory_space<vmem>>, %arg2: memref<2x16xf32, #tpu.memory_space<vmem>>, %arg3: memref<16x1xi32, #tpu.memory_space<vmem>>, %arg4: memref<1x16xi32, #tpu.memory_space<vmem>>, %arg5: memref<64x128xbf16, #tpu.memory_space<vmem>>, %arg6: memref<1x128xf32, #tpu.memory_space<vmem>>, %arg7: memref<1x128xf32, #tpu.memory_space<vmem>>, %arg8: memref<128x128xbf16, #tpu.memory_space<vmem>>, %arg9: memref<1x128xf32, #tpu.memory_space<vmem>>, %arg10: memref<128x64xbf16, #tpu.memory_space<vmem>>, %arg11: memref<1x64xf32, #tpu.memory_space<vmem>>, %arg12: memref<1x64xf32, #tpu.memory_space<vmem>>, %arg13: memref<64x128xbf16, #tpu.memory_space<vmem>>, %arg14: memref<1x128xf32, #tpu.memory_space<vmem>>, %arg15: memref<2x128xf32, #tpu.memory_space<vmem>>) attributes {dimension_semantics = [], scalar_prefetch = 0 : i64, scratch_operands = 0 : i64, tpu.core_type = #tpu.core_type<tc>} {
    %c0 = arith.constant 0 : index
    %c0_0 = arith.constant 0 : index
    %0 = vector.load %arg0[%c0, %c0_0] : memref<16x64xf32, #tpu.memory_space<vmem>>, vector<16x64xf32>
    %1 = arith.truncf %0 : vector<16x64xf32> to vector<16x64xbf16>
    %c0_1 = arith.constant 0 : index
    %c0_2 = arith.constant 0 : index
    %2 = vector.load %arg5[%c0_1, %c0_2] : memref<64x128xbf16, #tpu.memory_space<vmem>>, vector<64x128xbf16>
    %cst = arith.constant dense<0.000000e+00> : vector<16x128xf32>
    %3 = tpu.matmul %1, %2, %cst {dimension_numbers = #tpu.dot_dimension_numbers<[1], [0], [0], [1], [0, 0, 1, 1], [], []>} : vector<16x64xbf16>, vector<64x128xbf16>, vector<16x128xf32> -> vector<16x128xf32>
    %cst_3 = arith.constant 0.000000e+00 : f32
    %4 = vector.broadcast %cst_3 : f32 to vector<16x128xf32>
    %5 = arith.maximumf %3, %4 : vector<16x128xf32>
    %c0_4 = arith.constant 0 : index
    %c0_5 = arith.constant 0 : index
    %6 = vector.load %arg6[%c0_4, %c0_5] : memref<1x128xf32, #tpu.memory_space<vmem>>, vector<1x128xf32>
    %7 = vector.broadcast %6 : vector<1x128xf32> to vector<16x128xf32>
    %8 = arith.mulf %5, %7 : vector<16x128xf32>
    %c0_6 = arith.constant 0 : index
    %c0_7 = arith.constant 0 : index
    %9 = vector.load %arg7[%c0_6, %c0_7] : memref<1x128xf32, #tpu.memory_space<vmem>>, vector<1x128xf32>
    %10 = vector.broadcast %9 : vector<1x128xf32> to vector<16x128xf32>
    %11 = arith.addf %8, %10 : vector<16x128xf32>
    %c0_8 = arith.constant 0 : index
    %c0_9 = arith.constant 0 : index
    %12 = vector.load %arg1[%c0_8, %c0_9] : memref<16x2xf32, #tpu.memory_space<vmem>>, vector<16x1xf32>
    %c0_10 = arith.constant 0 : index
    %c0_11 = arith.constant 0 : index
    %13 = vector.load %arg2[%c0_10, %c0_11] : memref<2x16xf32, #tpu.memory_space<vmem>>, vector<1x16xf32>
    %14 = vector.broadcast %12 : vector<16x1xf32> to vector<16x16xf32>
    %15 = vector.broadcast %13 : vector<1x16xf32> to vector<16x16xf32>
    %16 = arith.subf %14, %15 : vector<16x16xf32>
    %17 = arith.mulf %16, %16 : vector<16x16xf32>
    %c0_12 = arith.constant 0 : index
    %c1 = arith.constant 1 : index
    %18 = vector.load %arg1[%c0_12, %c1] : memref<16x2xf32, #tpu.memory_space<vmem>>, vector<16x1xf32>
    %c1_13 = arith.constant 1 : index
    %c0_14 = arith.constant 0 : index
    %19 = vector.load %arg2[%c1_13, %c0_14] : memref<2x16xf32, #tpu.memory_space<vmem>>, vector<1x16xf32>
    %20 = vector.broadcast %18 : vector<16x1xf32> to vector<16x16xf32>
    %21 = vector.broadcast %19 : vector<1x16xf32> to vector<16x16xf32>
    %22 = arith.subf %20, %21 : vector<16x16xf32>
    %23 = arith.mulf %22, %22 : vector<16x16xf32>
    %24 = arith.addf %17, %23 : vector<16x16xf32>
    %c0_15 = arith.constant 0 : index
    %c0_16 = arith.constant 0 : index
    %25 = vector.load %arg3[%c0_15, %c0_16] : memref<16x1xi32, #tpu.memory_space<vmem>>, vector<16x1xi32>
    %c0_17 = arith.constant 0 : index
    %c0_18 = arith.constant 0 : index
    %26 = vector.load %arg4[%c0_17, %c0_18] : memref<1x16xi32, #tpu.memory_space<vmem>>, vector<1x16xi32>
    %27 = vector.broadcast %25 : vector<16x1xi32> to vector<16x16xi32>
    %28 = vector.broadcast %26 : vector<1x16xi32> to vector<16x16xi32>
    %29 = arith.cmpi eq, %27, %28 : vector<16x16xi32>
    %cst_19 = arith.constant 1.600000e+01 : f32
    %30 = vector.broadcast %cst_19 : f32 to vector<16x16xf32>
    %31 = arith.cmpf ole, %24, %30 : vector<16x16xf32>
    %32 = arith.andi %31, %29 : vector<16x16xi1>
    %cst_20 = arith.constant 1.000000e+00 : f32
    %cst_21 = arith.constant 0.000000e+00 : f32
    %33 = vector.broadcast %cst_20 : f32 to vector<16x16xf32>
    %34 = vector.broadcast %cst_21 : f32 to vector<16x16xf32>
    %35 = arith.select %32, %33, %34 : vector<16x16xi1>, vector<16x16xf32>
    %cst_22 = arith.constant dense<0.000000e+00> : vector<16xf32>
    %36 = vector.multi_reduction <add>, %35, %cst_22 [1] : vector<16x16xf32> to vector<16xf32>
    %37 = vector.shape_cast %36 : vector<16xf32> to vector<16x1xf32>
    %38 = math.rsqrt %37 : vector<16x1xf32>
    %39 = arith.truncf %11 : vector<16x128xf32> to vector<16x128xbf16>
    %c0_23 = arith.constant 0 : index
    %c0_24 = arith.constant 0 : index
    %40 = vector.load %arg8[%c0_23, %c0_24] : memref<128x128xbf16, #tpu.memory_space<vmem>>, vector<128x128xbf16>
    %cst_25 = arith.constant dense<0.000000e+00> : vector<16x128xf32>
    %41 = tpu.matmul %39, %40, %cst_25 {dimension_numbers = #tpu.dot_dimension_numbers<[1], [0], [0], [1], [0, 0, 1, 1], [], []>} : vector<16x128xbf16>, vector<128x128xbf16>, vector<16x128xf32> -> vector<16x128xf32>
    %42 = vector.broadcast %38 : vector<16x1xf32> to vector<16x128xf32>
    %43 = arith.mulf %41, %42 : vector<16x128xf32>
    %44 = arith.truncf %43 : vector<16x128xf32> to vector<16x128xbf16>
    %45 = arith.truncf %35 : vector<16x16xf32> to vector<16x16xbf16>
    %cst_26 = arith.constant dense<0.000000e+00> : vector<16x128xf32>
    %46 = tpu.matmul %45, %44, %cst_26 {dimension_numbers = #tpu.dot_dimension_numbers<[1], [0], [0], [1], [0, 0, 1, 1], [], []>} : vector<16x16xbf16>, vector<16x128xbf16>, vector<16x128xf32> -> vector<16x128xf32>
    %47 = vector.broadcast %38 : vector<16x1xf32> to vector<16x128xf32>
    %48 = arith.mulf %46, %47 : vector<16x128xf32>
    %c0_27 = arith.constant 0 : index
    %c0_28 = arith.constant 0 : index
    %49 = vector.load %arg9[%c0_27, %c0_28] : memref<1x128xf32, #tpu.memory_space<vmem>>, vector<1x128xf32>
    %50 = vector.broadcast %49 : vector<1x128xf32> to vector<16x128xf32>
    %51 = arith.addf %48, %50 : vector<16x128xf32>
    %cst_29 = arith.constant 0.000000e+00 : f32
    %52 = vector.broadcast %cst_29 : f32 to vector<16x128xf32>
    %53 = arith.maximumf %51, %52 : vector<16x128xf32>
    %54 = tpu.iota {dimensions = array<i32: 0>} : vector<2x16xi32>
    %c0_30 = arith.constant 0 : index
    %c0_31 = arith.constant 0 : index
    %55 = vector.load %arg4[%c0_30, %c0_31] : memref<1x16xi32, #tpu.memory_space<vmem>>, vector<1x16xi32>
    %56 = vector.broadcast %55 : vector<1x16xi32> to vector<2x16xi32>
    %57 = arith.cmpi eq, %56, %54 : vector<2x16xi32>
    %58 = arith.extui %57 : vector<2x16xi1> to vector<2x16xi32>
    %59 = arith.sitofp %58 : vector<2x16xi32> to vector<2x16xf32>
    %cst_32 = arith.constant dense<0.000000e+00> : vector<2xf32>
    %60 = vector.multi_reduction <add>, %59, %cst_32 [1] : vector<2x16xf32> to vector<2xf32>
    %61 = vector.shape_cast %60 : vector<2xf32> to vector<2x1xf32>
    %cst_33 = arith.constant 1.000000e+00 : f32
    %62 = vector.broadcast %cst_33 : f32 to vector<2x1xf32>
    %63 = arith.maximumf %61, %62 : vector<2x1xf32>
    %64 = math.rsqrt %63 : vector<2x1xf32>
    %65 = tpu.reciprocal %63 {approx = true} : vector<2x1xf32> -> vector<2x1xf32>
    %66 = arith.mulf %64, %65 : vector<2x1xf32>
    %67 = arith.truncf %59 : vector<2x16xf32> to vector<2x16xbf16>
    %68 = arith.truncf %53 : vector<16x128xf32> to vector<16x128xbf16>
    %cst_34 = arith.constant dense<0.000000e+00> : vector<2x128xf32>
    %69 = tpu.matmul %67, %68, %cst_34 {dimension_numbers = #tpu.dot_dimension_numbers<[1], [0], [0], [1], [0, 0, 1, 1], [], []>} : vector<2x16xbf16>, vector<16x128xbf16>, vector<2x128xf32> -> vector<2x128xf32>
    %70 = vector.broadcast %66 : vector<2x1xf32> to vector<2x128xf32>
    %71 = arith.mulf %70, %69 : vector<2x128xf32>
    %72 = arith.truncf %71 : vector<2x128xf32> to vector<2x128xbf16>
    %c0_35 = arith.constant 0 : index
    %c0_36 = arith.constant 0 : index
    %73 = vector.load %arg10[%c0_35, %c0_36] : memref<128x64xbf16, #tpu.memory_space<vmem>>, vector<128x64xbf16>
    %cst_37 = arith.constant dense<0.000000e+00> : vector<2x64xf32>
    %74 = tpu.matmul %72, %73, %cst_37 {dimension_numbers = #tpu.dot_dimension_numbers<[1], [0], [0], [1], [0, 0, 1, 1], [], []>} : vector<2x128xbf16>, vector<128x64xbf16>, vector<2x64xf32> -> vector<2x64xf32>
    %cst_38 = arith.constant 0.000000e+00 : f32
    %75 = vector.broadcast %cst_38 : f32 to vector<2x64xf32>
    %76 = arith.maximumf %74, %75 : vector<2x64xf32>
    %c0_39 = arith.constant 0 : index
    %c0_40 = arith.constant 0 : index
    %77 = vector.load %arg11[%c0_39, %c0_40] : memref<1x64xf32, #tpu.memory_space<vmem>>, vector<1x64xf32>
    %78 = vector.broadcast %77 : vector<1x64xf32> to vector<2x64xf32>
    %79 = arith.mulf %76, %78 : vector<2x64xf32>
    %c0_41 = arith.constant 0 : index
    %c0_42 = arith.constant 0 : index
    %80 = vector.load %arg12[%c0_41, %c0_42] : memref<1x64xf32, #tpu.memory_space<vmem>>, vector<1x64xf32>
    %81 = vector.broadcast %80 : vector<1x64xf32> to vector<2x64xf32>
    %82 = arith.addf %79, %81 : vector<2x64xf32>
    %83 = arith.truncf %82 : vector<2x64xf32> to vector<2x64xbf16>
    %c0_43 = arith.constant 0 : index
    %c0_44 = arith.constant 0 : index
    %84 = vector.load %arg13[%c0_43, %c0_44] : memref<64x128xbf16, #tpu.memory_space<vmem>>, vector<64x128xbf16>
    %cst_45 = arith.constant dense<0.000000e+00> : vector<2x128xf32>
    %85 = tpu.matmul %83, %84, %cst_45 {dimension_numbers = #tpu.dot_dimension_numbers<[1], [0], [0], [1], [0, 0, 1, 1], [], []>} : vector<2x64xbf16>, vector<64x128xbf16>, vector<2x128xf32> -> vector<2x128xf32>
    %c0_46 = arith.constant 0 : index
    %c0_47 = arith.constant 0 : index
    %86 = vector.load %arg14[%c0_46, %c0_47] : memref<1x128xf32, #tpu.memory_space<vmem>>, vector<1x128xf32>
    %87 = vector.broadcast %86 : vector<1x128xf32> to vector<2x128xf32>
    %88 = arith.addf %85, %87 : vector<2x128xf32>
    %c0_48 = arith.constant 0 : index
    %c0_49 = arith.constant 0 : index
    %89 = vector.load %arg15[%c0_48, %c0_49] : memref<2x128xf32, #tpu.memory_space<vmem>>, vector<2x128xf32>
    tpu.vector_store %arg15[%c0_48, %c0_49], %88 {strides = array<i32>} : memref<2x128xf32, #tpu.memory_space<vmem>>, vector<2x128xf32>,
    return
  }
}

</mosaic_0001>

<bundles_post_ra>
// kernel: tpu_custom_call.1
= control target key start
LH: loop header
LB: loop body
LE: loop exit
PB: predicated region body
PF: predicated region fallthrough
CT: control target
= control target key end

     0   :  { %20 = vsyncpa [#allocation3], 0  ;;  %s1334_s0 = inlined_call_operand.hbm [shape: f32[16,64], index: 0, kind: input, shape index: {}]   ;;  %s1335_s1 = inlined_call_operand.vmem [shape: f32[16,2], index: 1, kind: input, shape index: {}]   ;;  %s1336_s2 = inlined_call_operand.hbm [shape: f32[2,16], index: 2, kind: input, shape index: {}]   ;;  %s1337_s3 = inlined_call_operand.vmem [shape: s32[16,1], index: 3, kind: input, shape index: {}]   ;;  %s1338_s4 = inlined_call_operand.vmem [shape: s32[1,16], index: 4, kind: input, shape index: {}]   ;;  %s1339_s5 = inlined_call_operand.vmem [shape: bf16[64,128], index: 5, kind: input, shape index: {}]   ;;  %s1340_s6 = inlined_call_operand.hbm [shape: f32[1,128], index: 6, kind: input, shape index: {}]   ;;  %s1341_s7 = inlined_call_operand.hbm [shape: f32[1,128], index: 7, kind: input, shape index: {}]   ;;  %s1342_s8 = inlined_call_operand.vmem [shape: bf16[128,128], index: 8, kind: input, shape index: {}]   ;;  %s1343_s9 = inlined_call_operand.vmem [shape: f32[1,128], index: 9, kind: input, shape index: {}]   ;;  %s1344_s10 = inlined_call_operand.vmem [shape: bf16[128,64], index: 10, kind: input, shape index: {}]   ;;  %s1345_s11 = inlined_call_operand.vmem [shape: f32[1,64], index: 11, kind: input, shape index: {}]   ;;  %s1346_s12 = inlined_call_operand.vmem [shape: f32[1,64], index: 12, kind: input, shape index: {}]   ;;  %s1347_s13 = inlined_call_operand.vmem [shape: bf16[64,128], index: 13, kind: input, shape index: {}]   ;;  %s1348_s14 = inlined_call_operand.vmem [shape: f32[1,128], index: 14, kind: input, shape index: {}]   ;;  %s1349_s15 = inlined_call_operand.hbm [shape: f32[2,128], index: 15, kind: output, shape index: {}]  }
   0x1   :  { %21 = vsyncpa [#allocation6], 0 }
   0x2   :  { %22 = vsyncpa [#allocation9], 0 }
   0x3   :  { %23 = vsyncpa [#allocation4], 0  ;;  %s1030_s18 = smov [#allocation5]   ;;  %s1031_s20 = smov [#allocation2]  }
   0x4   :  { %s44_s19 = sshll.u32 %s1030_s18, 4  ;;  %s29_s21 = sshll.u32 %s1031_s20, 4  ;;  %s45_s19 = int_to_ptr.vmem [resolvable:$true] %s44_s19  ;;  %s1121_s21 = int_to_ptr.vmem [resolvable:$true] %s29_s21 }
   0x5   :  { %s912_s24 = scalar_lea.hbm %s1336_s2, 32 }
   0x6   :  { %p913_p0 = scmp.ne.s32.totalorder %s1336_s2, %s912_s24  ;;  %p916_p1 = scmp.lt.u32.totalorder %s912_s24, %s1336_s2 }
   0x8   :  { %p918_p2 = pnand %p916_p1, %p913_p0 }
   0xa   :  { %921 = shalt.err (!%p918_p2)
}
   0xb   :  { %s922_s29 = scalar_lea.vmem %s45_s19, 32  ;;  %p927_p4 = scmp.lt.s32.totalorder %s45_s19, %s45_s19 }
   0xc   :  { %p923_p3 = scmp.ne.s32.totalorder %s45_s19, %s922_s29  ;;  %p928_p5 = scmp.lt.s32.totalorder %s922_s29, %s922_s29 }
   0xe   :  { %p929_p6 = por %p928_p5, %p927_p4 }
  0x10   :  { %p930_p7 = pnand %p929_p6, %p923_p3 }
  0x12   :  { %933 = shalt.err (!%p930_p7)
}
  0x13   :  { %47 = dma.hbm_to_vmem [thread:$0]  %s1336_s2, 32, %s45_s19, [#allocation6]  }
  0x14   :  { %s934_s20 = scalar_lea.hbm %s1334_s0, 256 }
  0x15   :  { %p935_p8 = scmp.ne.s32.totalorder %s1334_s0, %s934_s20  ;;  %p938_p9 = scmp.lt.u32.totalorder %s934_s20, %s1334_s0 }
  0x17   :  { %p940_p10 = pnand %p938_p9, %p935_p8 }
  0x19   :  { %943 = shalt.err (!%p940_p10)
}
  0x1a   :  { %s944_s26 = scalar_lea.vmem %s1121_s21, 256  ;;  %p949_p12 = scmp.lt.s32.totalorder %s1121_s21, %s1121_s21 }
  0x1b   :  { %p945_p11 = scmp.ne.s32.totalorder %s1121_s21, %s944_s26  ;;  %p950_p13 = scmp.lt.s32.totalorder %s944_s26, %s944_s26 }
  0x1d   :  { %p951_p0 = por %p950_p13, %p949_p12 }
  0x1f   :  { %p952_p1 = pnand %p951_p0, %p945_p11 }
  0x21   :  { %955 = shalt.err (!%p952_p1)
}
  0x22   :  { %s1032_s2 = smov 128   ;;  %s1033_s19 = smov 8  }
  0x23   :  { %35 = dma.hbm_to_vmem [thread:$0]  %s1334_s0, 256, %s1121_s21, [#allocation3], %s1032_s2, %s1032_s2, %s1033_s19  }
  0x24   :  { %s1034_s29 = smov [#allocation7]   ;;  %s1035_s16 = smov [#allocation8]  }
  0x25   :  { %s60_s30 = sshll.u32 %s1034_s29, 4  ;;  %s70_s17 = sshll.u32 %s1035_s16, 4  ;;  %s61_s30 = int_to_ptr.vmem [resolvable:$true] %s60_s30  ;;  %s71_s17 = int_to_ptr.vmem [resolvable:$true] %s70_s17 }
  0x26   :  { %s956_s22 = scalar_lea.hbm %s1340_s6, 16 }
  0x27   :  { %p957_p2 = scmp.ne.s32.totalorder %s1340_s6, %s956_s22  ;;  %p960_p3 = scmp.lt.u32.totalorder %s956_s22, %s1340_s6 }
  0x29   :  { %p962_p4 = pnand %p960_p3, %p957_p2 }
  0x2b   :  { %965 = shalt.err (!%p962_p4)
}
  0x2c   :  { %s966_s0 = scalar_lea.vmem %s61_s30, 16  ;;  %s970_s21 = scalar_lea.vmem %s61_s30, 32 }
  0x2d   :  { %p967_p5 = scmp.ne.s32.totalorder %s61_s30, %s966_s0  ;;  %p971_p6 = scmp.lt.s32.totalorder %s61_s30, %s61_s30 }
  0x2e   :  { %p972_p7 = scmp.lt.s32.totalorder %s970_s21, %s966_s0 }
  0x30   :  { %p973_p8 = por %p972_p7, %p971_p6 }
  0x32   :  { %p974_p9 = pnand %p973_p8, %p967_p5 }
  0x34   :  { %977 = shalt.err (!%p974_p9)
}
  0x35   :  { %63 = dma.hbm_to_vmem [thread:$0]  %s1340_s6, 16, %s61_s30, [#allocation6]  }
  0x36   :  { %s978_s29 = scalar_lea.hbm %s1341_s7, 16 }
  0x37   :  { %p979_p10 = scmp.ne.s32.totalorder %s1341_s7, %s978_s29  ;;  %p982_p11 = scmp.lt.u32.totalorder %s978_s29, %s1341_s7 }
  0x39   :  { %p984_p12 = pnand %p982_p11, %p979_p10 }
  0x3b   :  { %987 = shalt.err (!%p984_p12)
}
  0x3c   :  { %s988_s23 = scalar_lea.vmem %s71_s17, 16  ;;  %s992_s24 = scalar_lea.vmem %s71_s17, 32 }
  0x3d   :  { %p989_p13 = scmp.ne.s32.totalorder %s71_s17, %s988_s23  ;;  %p993_p0 = scmp.lt.s32.totalorder %s71_s17, %s71_s17 }
  0x3e   :  { %p994_p1 = scmp.lt.s32.totalorder %s992_s24, %s988_s23 }
  0x40   :  { %p995_p2 = por %p994_p1, %p993_p0 }
  0x42   :  { %p996_p3 = pnand %p995_p2, %p989_p13 }
  0x44   :  { %999 = shalt.err (!%p996_p3)
}
  0x45   :  { %73 = dma.hbm_to_vmem [thread:$0]  %s1341_s7, 16, %s71_s17, [#allocation9]  }
  0x46   :  { %1022 = dma.done.wait [#allocation3], 256  }
  0x47   :  { %1023 = vsyncadd [#allocation3], 4294967040 }
  0x48   :  { %1024 = dma.done.wait [#allocation6], 48  }
  0x49   :  { %1025 = vsyncadd [#allocation6], 4294967248 }
  0x4a   :  { %1026 = dma.done.wait [#allocation9], 16  }
  0x4b   :  { %1027 = vsyncadd [#allocation9], 4294967280  ;;  %v1036_v0 = vmov 0.0   ;;  %vm1037_vm0 = vmmov 0   ;;  %v1038_v1 = vmov 1   ;;  %v1039_v2 = vmov 0  }
  0x4c   :  { %790 = vmatprep.subr.bf16.mxu0 %v1036_v0  ;;  %798 = vmatprep.mubr.msk.bf16.mxu0 %vm1037_vm0, %v1036_v0  ;;  %v880_v3 = vld [vmem:[%s1339_s5] sm:$0xff]   ;;  %v881_v4 = vld [vmem:[%s1339_s5 + $0x8] sm:$0xff]   ;;  %v882_v6 = vld [vmem:[%s1339_s5 + $0x10] sm:$0xff]   ;;  %vm136_vm1 = vcmask 523264   ;;  %vm262_vm4 = vcmask 130048   ;;  %vm443_vm10 = vcmask 123904  }
  0x4d   :  { %878 = vset.pattern.permute.xlu1 %v1038_v1  ;;  %877 = vset.pattern.permute.xlu0 %v1039_v2  ;;  %v201_v5 = vld [vmem:[%s1335_s1] sm:$0xff]  ;;  %v202_v7 = vld [vmem:[%s1335_s1 + $0x8] sm:$0xff]  ;;  %v883_v9 = vld [vmem:[%s1339_s5 + $0x18] sm:$0xff]   ;;  %s1040_s22 = smov [#allocation10]  }
  0x4e   :  { %802 = vmatprep.subr.bf16.mxu1 %v1036_v0  ;;  %818 = vmatprep.mubr.msk.bf16.mxu1 %vm1037_vm0, %v1036_v0  ;;  %v884_v8 = vld [vmem:[%s1342_s8] sm:$0xff]   ;;  %v102_v11 = vld [vmem:[#allocation2 + $0x8] sm:$0xff]  ;;  %v886_v15 = vld [vmem:[%s1342_s8 + $0x10] sm:$0xff]   ;;  %s709_s23 = sshll.u32 %s1040_s22, 4  ;;  %s710_s23 = int_to_ptr.vmem [resolvable:$true] %s709_s23 }
  0x4f   :  { %791 = vmatpush3.bf16.msra.mxu0 %v880_v3  ;;  %224 = vperm.xlu1 %878, %v201_v5   ;;  %v101_v10 = vld [vmem:[#allocation2] sm:$0xff]  ;;  %v885_v12 = vld [vmem:[%s1342_s8 + $0x8] sm:$0xff]   ;;  %v887_v17 = vld [vmem:[%s1342_s8 + $0x18] sm:$0xff]   ;;  %p1005_p5 = scmp.lt.s32.totalorder %s710_s23, %s710_s23 }
  0x50   :  { %792 = vmatprep.subr.bf16.mxu0 %v1036_v0  ;;  %206 = vperm.xlu0 %877, %v201_v5   ;;  %v242_v13 = vld [vmem:[%s1337_s3 + $0x8] sm:$0xff]  ;;  %v241_v14 = vld [vmem:[%s1337_s3] sm:$0xff]  ;;  %v103_v16 = vpack.c.bf16 %v102_v11, %v101_v10  ;;  %v890_v20 = vld [vmem:[%s1342_s8 + $0x30] sm:$0xff]  }
  0x51   :  { %803 = vmatpush3.bf16.msra.mxu1 %v884_v8  ;;  %v888_v18 = vld [vmem:[%s1342_s8 + $0x20] sm:$0xff]   ;;  %v889_v19 = vld [vmem:[%s1342_s8 + $0x28] sm:$0xff]   ;;  %v891_v21 = vld [vmem:[%s1342_s8 + $0x38] sm:$0xff]  }
  0x52   :  { %804 = vmatprep.subr.bf16.mxu1 %v1036_v0  ;;  %v728_v22 = vld [vmem:[#allocation5 + $0x1] ss:$0 sm:$0xff]  ;;  %v727_v23 = vld [vmem:[#allocation5] ss:$0 sm:$0xff]  ;;  %v729_v35 = vld [vmem:[%s1338_s4] ss:$0 sm:$0xff] }
  0x53   :  { %793 = vmatpush3.bf16.msra.mxu0 %v881_v4  ;;  %228 = vperm.xlu1 %878, %v202_v7   ;;  %v725_v47 = vld [vmem:[#allocation7] ss:$0 sm:$0xff]  ;;  %v726_v54 = vld [vmem:[#allocation8] ss:$0 sm:$0xff] }
  0x54   :  { %794 = vmatprep.subr.bf16.mxu0 %v1036_v0  ;;  %211 = vperm.xlu0 %877, %v202_v7   ;;  %v438_v7 = vlaneseq }
  0x55   :  { %805 = vmatpush3.bf16.msra.mxu1 %v885_v12  ;;  %v739_v12 = vld [vmem:[%s1343_s9] ss:$0 sm:$0xff] }
  0x56   :  { %806 = vmatprep.subr.bf16.mxu1 %v1036_v0  ;;  %v439_v8 = vshrl.u32 %v438_v7, 7 }
  0x57   :  { %795 = vmatpush3.bf16.msra.mxu0 %v882_v6  ;;  %879 = vset.pattern.permute.xlu1 %v1039_v2 }
  0x58   :  { %796 = vmatprep.subr.bf16.mxu0 %v1036_v0  ;;  %245 = vperm.xlu0 %877, %v241_v14   ;;  %vm440_vm9 = vcmp.eq.s32.totalorder %v729_v35, %v439_v8 }
  0x59   :  { %248 = vperm.xlu1 %879, %v242_v13   ;;  %807 = vmatpush3.bf16.msra.mxu1 %v886_v15 }
  0x5a   :  { %808 = vmatprep.subr.bf16.mxu1 %v1036_v0 }
  0x5b   :  { %797 = vmatpush3.bf16.msra.mxu0 %v883_v9  ;;  %v740_v9 = vsel %vm440_vm9, 1.0, %v1036_v0 }
  0x5c   :  { %828 = vmatprep.subr.bf16.mxu0 %v1036_v0  ;;  %v444_v10 = vsel %vm443_vm10, %v740_v9, 0.0 }
  0x5d   :  { %809 = vmatpush3.bf16.msra.mxu1 %v887_v17 }
  0x5e   :  { %799 = vmatmul.mubr.msk.bf16.vlgmr.msra.gmra.mrb[0].mxu0 %vm136_vm1, %v103_v16  ;;  %810 = vmatprep.subr.bf16.mxu1 %v1036_v0 }
  0x5f   :  { %830 = vmatprep.mubr.msk.bf16.mxu0 %vm1037_vm0, %v1036_v0 }
  0x61   :  { %811 = vmatpush3.bf16.msra.mxu1 %v888_v18 }
  0x62   :  { %812 = vmatprep.subr.bf16.mxu1 %v1036_v0 }
  0x65   :  { %813 = vmatpush3.bf16.msra.mxu1 %v889_v19 }
  0x66   :  { %814 = vmatprep.subr.bf16.mxu1 %v1036_v0 }
  0x69   :  { %815 = vmatpush3.bf16.msra.mxu1 %v890_v20 }
  0x6a   :  { %816 = vmatprep.subr.bf16.mxu1 %v1036_v0 }
  0x6d   :  { %817 = vmatpush3.bf16.msra.mxu1 %v891_v21 }
  0x6e   :  { %822 = vmatprep.subr.bf16.mxu1 %v1036_v0 }
  0xce   :  { %v225_v24 = vpop.permute.xlu1 %224 }
  0xcf   :  { %v207_v25 = vpop.permute.xlu0 %206  ;;  %v235_v26 = vsub.f32 %v225_v24, %v728_v22  ;;  %v892_v24 = vld [vmem:[%s1344_s10] sm:$0xff]  }
  0xd0   :  { %v218_v27 = vsub.f32 %v207_v25, %v727_v23  ;;  %v893_v25 = vld [vmem:[%s1344_s10 + $0x8] sm:$0xff]  }
  0xd1   :  { %v237_v28 = vmul.f32 %v235_v26, %v235_v26  ;;  %v894_v26 = vld [vmem:[%s1344_s10 + $0x10] sm:$0xff]  }
  0xd2   :  { %v220_v29 = vmul.f32 %v218_v27, %v218_v27  ;;  %v229_v30 = vpop.permute.xlu1 %228  ;;  %v895_v27 = vld [vmem:[%s1344_s10 + $0x18] sm:$0xff]  }
  0xd3   :  { %v212_v31 = vpop.permute.xlu0 %211  ;;  %v236_v32 = vsub.f32 %v229_v30, %v728_v22  ;;  %v898_v30 = vld [vmem:[%s1344_s10 + $0x30] sm:$0xff]  }
  0xd4   :  { %v219_v33 = vsub.f32 %v212_v31, %v727_v23  ;;  %v239_v34 = vadd.f32 %v237_v28, %v220_v29  ;;  %v451_v23 = vpack.c.bf16 %v740_v9, %v740_v9  ;;  %v896_v28 = vld [vmem:[%s1344_s10 + $0x20] sm:$0xff]   ;;  %v897_v29 = vld [vmem:[%s1344_s10 + $0x28] sm:$0xff]   ;;  %v899_v31 = vld [vmem:[%s1344_s10 + $0x38] sm:$0xff]  }
  0xd5   :  { %v238_v36 = vmul.f32 %v236_v32, %v236_v32  ;;  %v900_v32 = vld [vmem:[%s1347_s13] sm:$0xff]  }
  0xd6   :  { %v221_v37 = vmul.f32 %v219_v33, %v219_v33  ;;  %vm256_vm2 = vcmp.le.f32.partialorder %v239_v34, 16.0  ;;  %v901_v33 = vld [vmem:[%s1347_s13 + $0x8] sm:$0xff]  }
  0xd7   :  { %v246_v38 = vpop.permute.xlu0 %245 }
  0xd8   :  { %v249_v39 = vpop.permute.xlu1 %248  ;;  %v240_v40 = vadd.f32 %v238_v36, %v221_v37  ;;  %vm254_vm3 = vcmp.eq.s32.totalorder %v246_v38, %v729_v35 }
  0xd9   :  { %vm255_vm5 = vcmp.eq.s32.totalorder %v249_v39, %v729_v35  ;;  %vm258_vm6 = vmand %vm256_vm2, %vm254_vm3 }
  0xda   :  { %vm257_vm7 = vcmp.le.f32.partialorder %v240_v40, 16.0  ;;  %v260_v41 = vsel %vm258_vm6, 1.0, %v1036_v0 }
  0xdb   :  { %vm259_vm8 = vmand %vm257_vm7, %vm255_vm5  ;;  %v263_v42 = vsel %vm262_vm4, %v260_v41, 0.0 }
  0xdc   :  { %264 = vadd.xlane.f32.xlu0 %v263_v42  ;;  %v261_v43 = vsel %vm259_vm8, 1.0, %v1036_v0 }
  0xdd   :  { %v266_v44 = vsel %vm262_vm4, %v261_v43, 0.0  ;;  %v380_v45 = vpack.c.bf16 %v261_v43, %v260_v41 }
  0xde   :  { %267 = vadd.xlane.f32.xlu1 %v266_v44 }
  0xe0   :  { %445 = vadd.xlane.f32.xlu0 %v444_v10 }
 0x131   :  { %v174_v46 = vpop.f32.mrb[0].mxu0 }
 0x132   :  { %v181_v48 = vmax.f32 %v174_v46, 0.0  ;;  %v800_v49 = vpop.f32.mrb[1].mxu0  ;;  %v903_v46 = vld [vmem:[%s1347_s13 + $0x18] sm:$0xff]  }
 0x133   :  { %v177_v50 = vpop.f32.mrb[2].mxu0 }
 0x134   :  { %v190_v51 = vmul.f32 %v725_v47, %v181_v48  ;;  %v182_v52 = vmax.f32 %v177_v50, 0.0  ;;  %v801_v53 = vpop.f32.mrb[3].mxu0  ;;  %v750_v48 = vld [vmem:[%s1345_s11] ss:$0 sm:$0xff]  ;;  %s1000_s11 = scalar_lea.vmem %s710_s23, 32 }
 0x135   :  { %p1001_p4 = scmp.ne.s32.totalorder %s710_s23, %s1000_s11  ;;  %p1006_p6 = scmp.lt.s32.totalorder %s1000_s11, %s1000_s11 }
 0x136   :  { %v191_v55 = vmul.f32 %v725_v47, %v182_v52  ;;  %v199_v56 = vadd.f32 %v726_v54, %v190_v51  ;;  %v751_v51 = vld [vmem:[%s1346_s12] ss:$0 sm:$0xff] }
 0x137   :  { %p1007_p7 = por %p1006_p6, %p1005_p5 }
 0x138   :  { %v200_v57 = vadd.f32 %v726_v54, %v191_v55 }
 0x139   :  { %p1008_p8 = pnand %p1007_p7, %p1001_p4 }
 0x13a   :  { %v271_v58 = vpack.c.bf16 %v200_v57, %v199_v56  ;;  %v752_v56 = vld [vmem:[%s1348_s14] ss:$0 sm:$0xff] }
 0x13c   :  { %819 = vmatmul.mubr.bf16.vlgmr.msra.gmra.mrb[0].mxu1 %v271_v58 }
 0x13d   :  { %824 = vmatprep.mubr.msk.bf16.mxu1 %vm1037_vm0, %v1036_v0 }
 0x169   :  { %v265_v59 = vpop.xlane.xlu0 %264 }
 0x16a   :  { %904 = vrsqrt.f32 %v265_v59 }
 0x16b   :  { %v268_v60 = vpop.xlane.xlu1 %267 }
 0x16c   :  { %906 = vrsqrt.f32 %v268_v60 }
 0x16d   :  { %v446_v34 = vpop.xlane.xlu0 %445 }
 0x16e   :  { %v447_v35 = vmax.f32 %v446_v34, 1.0 }
 0x170   :  { %908 = vrsqrt.f32 %v447_v35 }
 0x171   :  { %910 = vrcp.f32 %v447_v35 }
 0x174   :  { %v905_v62 = vpop.eup %904 }
 0x176   :  { %v907_v1 = vpop.eup %906 }
 0x17a   :  { %v909_v36 = vpop.eup %908 }
 0x17b   :  { %v911_v37 = vpop.eup %910 }
 0x17c   :  { %v450_v38 = vmul.f32 %v911_v37, %v909_v36 }
 0x20f   :  { %v370_v61 = vpop.f32.mrb[0].mxu1 }
 0x210   :  { %v820_v63 = vpop.f32.mrb[1].mxu1  ;;  %v377_v3 = vmul.f32 %v905_v62, %v370_v61 }
 0x211   :  { %v373_v2 = vpop.f32.mrb[2].mxu1 }
 0x212   :  { %v378_v4 = vmul.f32 %v907_v1, %v373_v2  ;;  %v821_v5 = vpop.f32.mrb[3].mxu1 }
 0x214   :  { %v379_v6 = vpack.c.bf16 %v378_v4, %v377_v3 }
 0x216   :  { %823 = vmatpush3.bf16.msra.mxu1 %v379_v6 }
 0x217   :  { %854 = vmatprep.subr.bf16.mxu1 %v1036_v0 }
 0x219   :  { %825 = vmatmul.mubr.msk.bf16.vlgmr.msra.gmra.mrb[4].mxu1 %vm262_vm4, %v380_v45  ;;  %v902_v45 = vld [vmem:[%s1347_s13 + $0x10] sm:$0xff]  }
 0x21a   :  { %862 = vmatprep.mubr.msk.bf16.mxu1 %vm1037_vm0, %v1036_v0  ;;  %855 = vmatpush3.bf16.msra.mxu1 %v900_v32 }
 0x21b   :  { %856 = vmatprep.subr.bf16.mxu1 %v1036_v0 }
 0x21e   :  { %857 = vmatpush3.bf16.msra.mxu1 %v901_v33 }
 0x21f   :  { %858 = vmatprep.subr.bf16.mxu1 %v1036_v0 }
 0x222   :  { %859 = vmatpush3.bf16.msra.mxu1 %v902_v45 }
 0x223   :  { %860 = vmatprep.subr.bf16.mxu1 %v1036_v0 }
 0x226   :  { %861 = vmatpush3.bf16.msra.mxu1 %v903_v46 }
 0x2ec   :  { %v418_v11 = vpop.f32.mrb[4].mxu1 }
 0x2ed   :  { %v425_v13 = vmul.f32 %v905_v62, %v418_v11  ;;  %v826_v14 = vpop.f32.mrb[5].mxu1 }
 0x2ee   :  { %v421_v15 = vpop.f32.mrb[6].mxu1 }
 0x2ef   :  { %v434_v16 = vadd.f32 %v739_v12, %v425_v13  ;;  %v426_v17 = vmul.f32 %v907_v1, %v421_v15  ;;  %v827_v18 = vpop.f32.mrb[7].mxu1 }
 0x2f1   :  { %v435_v19 = vadd.f32 %v739_v12, %v426_v17  ;;  %v436_v20 = vmax.f32 %v434_v16, 0.0 }
 0x2f3   :  { %v437_v21 = vmax.f32 %v435_v19, 0.0 }
 0x2f5   :  { %v452_v22 = vpack.c.bf16 %v437_v21, %v436_v20 }
 0x2f7   :  { %829 = vmatpush3.bf16.msra.mxu0 %v452_v22 }
 0x2f8   :  { %834 = vmatprep.subr.bf16.mxu0 %v1036_v0 }
 0x2fa   :  { %831 = vmatmul.mubr.msk.bf16.vlgmr.msra.gmra.mrb[4].mxu0 %vm262_vm4, %v451_v23 }
 0x2fb   :  { %835 = vmatpush3.bf16.msra.mxu0 %v892_v24  ;;  %850 = vmatprep.mubr.msk.bf16.mxu0 %vm1037_vm0, %v1036_v0 }
 0x2fc   :  { %836 = vmatprep.subr.bf16.mxu0 %v1036_v0 }
 0x2ff   :  { %837 = vmatpush3.bf16.msra.mxu0 %v893_v25 }
 0x300   :  { %838 = vmatprep.subr.bf16.mxu0 %v1036_v0 }
 0x303   :  { %839 = vmatpush3.bf16.msra.mxu0 %v894_v26 }
 0x304   :  { %840 = vmatprep.subr.bf16.mxu0 %v1036_v0 }
 0x307   :  { %841 = vmatpush3.bf16.msra.mxu0 %v895_v27 }
 0x308   :  { %842 = vmatprep.subr.bf16.mxu0 %v1036_v0 }
 0x30b   :  { %843 = vmatpush3.bf16.msra.mxu0 %v896_v28 }
 0x30c   :  { %844 = vmatprep.subr.bf16.mxu0 %v1036_v0 }
 0x30f   :  { %845 = vmatpush3.bf16.msra.mxu0 %v897_v29 }
 0x310   :  { %846 = vmatprep.subr.bf16.mxu0 %v1036_v0 }
 0x313   :  { %847 = vmatpush3.bf16.msra.mxu0 %v898_v30 }
 0x314   :  { %848 = vmatprep.subr.bf16.mxu0 %v1036_v0 }
 0x317   :  { %849 = vmatpush3.bf16.msra.mxu0 %v899_v31 }
 0x3cd   :  { %v490_v39 = vpop.f32.mrb[4].mxu0 }
 0x3ce   :  { %v496_v40 = vmul.f32 %v490_v39, %v450_v38  ;;  %v832_v41 = vpop.f32.mrb[5].mxu0 }
 0x3cf   :  { %v493_v42 = vpop.f32.mrb[6].mxu0 }
 0x3d0   :  { %v497_v43 = vpack.c.bf16 %v496_v40, %v496_v40  ;;  %v833_v44 = vpop.f32.mrb[7].mxu0 }
 0x3d2   :  { %851 = vmatmul.mubr.bf16.vlgmr.msra.gmra.mrb[8].mxu0 %v497_v43 }
 0x4a5   :  { %v596_v47 = vpop.f32.mrb[8].mxu0 }
 0x4a6   :  { %v602_v49 = vmax.f32 %v596_v47, 0.0  ;;  %v852_v50 = vpop.f32.mrb[9].mxu0 }
 0x4a7   :  { %v599_v52 = vpop.f32.mrb[10].mxu0 }
 0x4a8   :  { %v610_v53 = vmul.f32 %v750_v48, %v602_v49  ;;  %v853_v54 = vpop.f32.mrb[11].mxu0 }
 0x4aa   :  { %v618_v0 = vadd.f32 %v751_v51, %v610_v53 }
 0x4ac   :  { %v619_v55 = vpack.c.bf16 %v618_v0, %v618_v0 }
 0x4ae   :  { %863 = vmatmul.mubr.msk.bf16.vlgmr.msra.gmra.mrb[8].mxu1 %vm136_vm1, %v619_v55 }
 0x581   :  { %v696_v57 = vpop.f32.mrb[8].mxu1 }
 0x582   :  { %v697_v58 = vadd.f32 %v752_v56, %v696_v57  ;;  %v864_v59 = vpop.f32.mrb[9].mxu1 }
 0x583   :  { %v699_v60 = vpop.f32.mrb[10].mxu1 }
 0x584   :  { %702 = vst [vmem:[#allocation10] sm:$0x3] %v697_v58  ;;  %v865_v61 = vpop.f32.mrb[11].mxu1 }
 0x585   :  { %1011 = shalt.err (!%p1008_p8)
}
 0x586   :  { %s1012_s14 = scalar_lea.hbm %s1349_s15, 32 }
 0x587   :  { %p1013_p9 = scmp.ne.s32.totalorder %s1349_s15, %s1012_s14  ;;  %p1016_p10 = scmp.lt.u32.totalorder %s1012_s14, %s1349_s15 }
 0x589   :  { %p1018_p11 = pnand %p1016_p10, %p1013_p9 }
 0x58b   :  { %1021 = shalt.err (!%p1018_p11)
}
 0x58c   :  { %712 = dma.vmem_to_hbm [thread:$0]  %s710_s23, 32, %s1349_s15, [#allocation4]  }
 0x58d   :  { %1028 = dma.done.wait [#allocation4], 32  }
 0x58e   :  { %1029 = vsyncadd [#allocation4], 4294967264 }
 0x58f   :  { %716 = vsyncpa [#allocation3], 1 }
 0x590   :  { %717 = vsyncpa [#allocation6], 1 }
 0x591   :  { %718 = vsyncpa [#allocation9], 1 }
 0x592   :  { %719 = vsyncpa [#allocation4], 1 }

</bundles_post_ra>
